<compile_context>
chip_gen: v5e
topology: v5e:2x2
jax: 0.10.0
libtpu: 0.0.40
codegen_flags: <defaults>
</compile_context>

<pallas_src>
import numpy as np
import jax
import jax.numpy as jnp
from jax.experimental import pallas as pl
from jax.experimental.pallas import tpu as pltpu

LAYER_NORM_EPS = 1e-12
_LANE = 128          # candidate padding granularity (lane-dense score tiles)
_MAX_C_TILE = 4096   # hard cap on candidate tile rows (1-2 MiB bf16 tiles)
_DMA_WINDOW = 16     # outstanding row-gather DMAs per grid step


def _gelu_tanh(x):
    # tanh-approximate GELU (the callable passed as config.hidden_act)
    c = np.float32(np.sqrt(2.0 / np.pi))
    return 0.5 * x * (1.0 + jnp.tanh(c * (x + 0.044715 * x * x * x)))


# --------------------------------------------------------------------------
# Stage 1: EntityPredictionHeadTransform for all B rows in one MXU matmul.
# --------------------------------------------------------------------------
def _transform_kernel(h_ref, w_ref, b_ref, g_ref, beta_ref, x_ref):
    x = jnp.dot(h_ref[...], w_ref[...],                       # bf16 x bf16
                preferred_element_type=jnp.float32)           # f32 accumulate
    x = _gelu_tanh(x + b_ref[...])                            # f32 GELU
    mu = jnp.mean(x, axis=-1, keepdims=True)                  # f32 LayerNorm
    var = jnp.mean(jnp.square(x - mu), axis=-1, keepdims=True)
    x = (x - mu) * jax.lax.rsqrt(var + LAYER_NORM_EPS)
    x_ref[...] = x * g_ref[...] + beta_ref[...]               # [B, E] f32


def _run_transform(hidden, params, matmul_dtype=jnp.bfloat16):
    B, _ = hidden.shape
    E = params["dense_w"].shape[1]
    return pl.pallas_call(
        _transform_kernel,
        out_shape=jax.ShapeDtypeStruct((B, E), jnp.float32),
    )(hidden.astype(matmul_dtype),
      params["dense_w"].astype(matmul_dtype),
      params["dense_b"].astype(jnp.float32).reshape(1, E),
      params["ln_gamma"].astype(jnp.float32).reshape(1, E),
      params["ln_beta"].astype(jnp.float32).reshape(1, E))


# --------------------------------------------------------------------------
# Stage 2: fused decoder-row gather + candidate scoring.
# --------------------------------------------------------------------------
def _score_kernel(idx_ref, len_ref, x_ref, dec_ref, cbias_ref, out_ref,
                  cand_vmem, sem):
    b = pl.program_id(0)
    j = pl.program_id(1)
    tc = cand_vmem.shape[0]
    cmax = pl.num_programs(1) * tc
    start = j * tc
    # number of real (non-padding) candidates in this tile
    n_real = jnp.clip(len_ref[b] - start, 0, tc)

    @pl.when(n_real > 0)          # fully-padded tile: no DMA, no MXU, no store
    def _():
        base = b * cmax + start

        def _row_copy(r, row):
            # one decoder row HBM -> one row of the VMEM gather scratch
            return pltpu.make_async_copy(dec_ref.at[pl.ds(row, 1)],
                                         cand_vmem.at[pl.ds(r, 1)],
                                         sem.at[r % _DMA_WINDOW])

        def _issue(r, carry):
            @pl.when(r >= _DMA_WINDOW)        # free the sem slot being reused
            def _():
                _row_copy(r - _DMA_WINDOW, 0).wait()
            _row_copy(r, idx_ref[base + r]).start()
            return carry

        jax.lax.fori_loop(0, n_real, _issue, 0)

        def _drain(r, carry):                 # wait for the last <=16 copies
            _row_copy(r, 0).wait()
            return carry

        jax.lax.fori_loop(jnp.maximum(n_real - _DMA_WINDOW, 0), n_real,
                          _drain, 0)

        # MXU contraction over E: [1,E] x [tc,E]^T -> [1,tc], f32 accumulation.
        # Rows >= n_real hold stale scratch data; their scores land in padded
        # output slots that the wrapper slices away.
        scores = jax.lax.dot_general(
            x_ref[0], cand_vmem[...], (((1,), (1,)), ((), ())),
            preferred_element_type=jnp.float32)
        out_ref[0] = scores + cbias_ref[0]


def _run_score_kernel(idx_flat, lens, x_rows, decoder, cand_bias, tc):
    B, _, E = x_rows.shape
    cmax = cand_bias.shape[-1]
    n_ct = cmax // tc
    out = pl.pallas_call(
        _score_kernel,
        out_shape=jax.ShapeDtypeStruct((B, 1, cmax), jnp.float32),
        grid_spec=pltpu.PrefetchScalarGridSpec(
            num_scalar_prefetch=2,                       # idx_flat, lens (SMEM)
            grid=(B, n_ct),
            in_specs=[
                pl.BlockSpec((1, 1, E), lambda b, j, idx, ln: (b, 0, 0)),
                pl.BlockSpec(memory_space=pl.ANY),       # decoder stays in HBM
                pl.BlockSpec((1, 1, tc), lambda b, j, idx, ln: (b, 0, j)),
            ],
            out_specs=pl.BlockSpec((1, 1, tc), lambda b, j, idx, ln: (b, 0, j)),
            scratch_shapes=[
                pltpu.VMEM((tc, E), decoder.dtype),      # gathered cand tile
                pltpu.SemaphoreType.DMA((_DMA_WINDOW,)),
            ],
        ),
        compiler_params=pltpu.CompilerParams(
            # candidate axis is stateless -> megacore may shard it too (v7x)
            dimension_semantics=("parallel", "parallel"),
            vmem_limit_bytes=32 * 1024 * 1024,
        ),
    )(idx_flat, lens, x_rows, decoder, cand_bias)
    return out.reshape(B, cmax)


def _pick_candidate_tile(cmax, emb_size, stream_dtype, tc_cap=None):
    """Candidate tile rows from a per-generation VMEM budget (128-row pow2)."""
    if tc_cap is None:
        try:
            vmem_bytes = pltpu.get_tpu_info().vmem_capacity_bytes
        except Exception:
            vmem_bytes = 64 * 1024 * 1024          # v7x per-core (smallest gen)
        budget = min(vmem_bytes // 8, 8 * 1024 * 1024)   # gather-scratch budget
        row_bytes = emb_size * jnp.dtype(stream_dtype).itemsize
        tc_cap = max(_LANE, budget // row_bytes)
    tc_cap = min(tc_cap, _MAX_C_TILE)
    tc = _LANE
    while tc * 2 <= min(cmax, tc_cap):
        tc *= 2
    return tc


def entity_prediction_head_candidate_list(params, hidden_states, list_cand_idx,
                                          stream_dtype=jnp.bfloat16,
                                          tc_cap=None):
    """Forward pass of EntityPredictionHead_CandidateList.

    hidden_states  : [B, H] float32
    list_cand_idx  : list of length B of int32 arrays (candidate entity ids)
    returns        : list of length B of float32 score vectors (ragged)
    """
    B, _ = hidden_states.shape
    assert B == len(list_cand_idx)
    lens_py = [int(c.shape[0]) for c in list_cand_idx]
    max_len = max(lens_py)
    E = params["decoder"].shape[1]

    # Lane-dense (multiple of 128) + pow2-bucketed padding (bounded retracing).
    # Fully-padded tiles are skipped inside the kernel, so the padding only
    # costs per-grid-step overhead, not DMA/MXU work.
    n_tiles = -(-max_len // _LANE)
    n_tiles = 1 << (n_tiles - 1).bit_length()
    cmax = n_tiles * _LANE
    tc = _pick_candidate_tile(cmax, E, stream_dtype, tc_cap)

    idx_pad = np.zeros((B, cmax), dtype=np.int32)
    for i, c in enumerate(list_cand_idx):
        idx_pad[i, : lens_py[i]] = np.asarray(c, dtype=np.int32)
    idx_flat = jnp.asarray(idx_pad.reshape(-1))              # -> SMEM (prefetch)
    lens = jnp.asarray(np.asarray(lens_py, dtype=np.int32))  # -> SMEM (prefetch)

    # Stage 1: transform for all rows at once; hand x to stage 2 in bf16 so the
    # scoring kernel has no per-tile cast.
    x = _run_transform(hidden_states, params)                 # [B, E] f32
    x_rows = x.astype(stream_dtype).reshape(B, 1, E)

    # Stage 2: fused gather + scoring.  The decoder table is NOT gathered by
    # XLA — it stays in HBM and rows are DMA'd inside the kernel.
    # TODO(synk): the [B, cmax] f32 entity-bias gather stays an XLA jnp.take
    # (<1% of embedding traffic); fuse via SMEM scalars if it ever matters.
    decoder = params["decoder"].astype(stream_dtype)          # [V, E]
    cand_bias = jnp.take(params["entity_bias"], jnp.asarray(idx_pad), axis=0)
    cand_bias = cand_bias.astype(jnp.float32).reshape(B, 1, cmax)

    scores = _run_score_kernel(idx_flat, lens, x_rows, decoder, cand_bias, tc)
    return [scores[i, : lens_py[i]] for i in range(B)]


# --------------------------------------------------------------------------
# pure-JAX f32 reference of the PyTorch forward
# --------------------------------------------------------------------------
def _reference(params, hidden_states, list_cand_idx):
    x = hidden_states @ params["dense_w"] + params["dense_b"]
    x = _gelu_tanh(x)
    mu = jnp.mean(x, axis=-1, keepdims=True)
    var = jnp.mean(jnp.square(x - mu), axis=-1, keepdims=True)
    x = (x - mu) / jnp.sqrt(var + LAYER_NORM_EPS)
    x = x * params["ln_gamma"] + params["ln_beta"]
    out = []
    for i, idx in enumerate(list_cand_idx):
        ce = params["decoder"][idx]                 # [c, E]
        bias = params["entity_bias"][idx]           # [c]
        out.append(jnp.einsum("ch,h->c", ce, x[i]) + bias)
    return out


if __name__ == "__main__":
    # small synthetic config: hidden=64, entity_emb_size=128, entity_vocab=200
    B, H, E, V = 2, 64, 128, 200

    key = jax.random.PRNGKey(0)
    k_hid, k_w, k_b, k_dec, k_bias, k_idx = jax.random.split(key, 6)

    params = {
        "dense_w": jax.random.normal(k_w, (H, E), jnp.float32) * 0.05,
        "dense_b": jax.random.normal(k_b, (E,), jnp.float32) * 0.02,
        "ln_gamma": jnp.ones((E,), jnp.float32),
        "ln_beta": jnp.zeros((E,), jnp.float32),
        "decoder": jax.random.normal(k_dec, (V, E), jnp.float32) * 0.1,
        # use_entity_bias=True (zero-init in PyTorch; perturb so the path is hit)
        "entity_bias": jax.random.normal(k_bias, (V,), jnp.float32) * 0.01,
    }
    hidden_states = jax.random.normal(k_hid, (B, H), jnp.float32)

    # ragged candidate lists: the long one spans two 128-wide tiles (exercises
    # boundary-tile masking); the short one exercises fully-padded-tile skipping
    # when tc is forced down to 128 in run 2.
    list_cand_idx = [
        jnp.array([3, 17, 42, 5, 60], dtype=jnp.int32),
        jax.random.randint(k_idx, (180,), 0, V, dtype=jnp.int32),
    ]

    ref = _reference(params, hidden_states, list_cand_idx)

    # run 1: production tile sizing (tc derived from the VMEM budget)
    out1 = entity_prediction_head_candidate_list(params, hidden_states,
                                                 list_cand_idx)
    # run 2: forced small tiles -> multi-tile grid + padded-tile skip path
    out2 = entity_prediction_head_candidate_list(params, hidden_states,
                                                 list_cand_idx, tc_cap=128)
    out1 = [jax.block_until_ready(o) for o in out1]
    out2 = [jax.block_until_ready(o) for o in out2]

    # bf16 streaming of x and candidate embeddings -> relaxed tolerance vs f32
    for out in (out1, out2):
        for o, r in zip(out, ref):
            np.testing.assert_allclose(np.asarray(o), np.asarray(r),
                                       rtol=3e-2, atol=3e-2)

    print("KERNEL_OK")
</pallas_src>

<mosaic_0001>
module attributes {stable_mosaic.version = 11 : i64} {
  func.func @_transform_kernel(%arg0: memref<2x64xbf16, #tpu.memory_space<vmem>>, %arg1: memref<64x128xbf16, #tpu.memory_space<vmem>>, %arg2: memref<1x128xf32, #tpu.memory_space<vmem>>, %arg3: memref<1x128xf32, #tpu.memory_space<vmem>>, %arg4: memref<1x128xf32, #tpu.memory_space<vmem>>, %arg5: memref<2x128xf32, #tpu.memory_space<vmem>>) attributes {dimension_semantics = [], scalar_prefetch = 0 : i64, scratch_operands = 0 : i64, tpu.core_type = #tpu.core_type<tc>} {
    %c0 = arith.constant 0 : index
    %c0_0 = arith.constant 0 : index
    %0 = vector.load %arg0[%c0, %c0_0] : memref<2x64xbf16, #tpu.memory_space<vmem>>, vector<2x64xbf16>
    %c0_1 = arith.constant 0 : index
    %c0_2 = arith.constant 0 : index
    %1 = vector.load %arg1[%c0_1, %c0_2] : memref<64x128xbf16, #tpu.memory_space<vmem>>, vector<64x128xbf16>
    %cst = arith.constant dense<0.000000e+00> : vector<2x128xf32>
    %2 = tpu.matmul %0, %1, %cst {dimension_numbers = #tpu.dot_dimension_numbers<[1], [0], [0], [1], [0, 0, 1, 1], [], []>} : vector<2x64xbf16>, vector<64x128xbf16>, vector<2x128xf32> -> vector<2x128xf32>
    %c0_3 = arith.constant 0 : index
    %c0_4 = arith.constant 0 : index
    %3 = vector.load %arg2[%c0_3, %c0_4] : memref<1x128xf32, #tpu.memory_space<vmem>>, vector<1x128xf32>
    %4 = vector.broadcast %3 : vector<1x128xf32> to vector<2x128xf32>
    %5 = arith.addf %2, %4 : vector<2x128xf32>
    %cst_5 = arith.constant 5.000000e-01 : f32
    %6 = vector.broadcast %cst_5 : f32 to vector<2x128xf32>
    %7 = arith.mulf %6, %5 : vector<2x128xf32>
    %cst_6 = arith.constant 4.471500e-02 : f32
    %8 = vector.broadcast %cst_6 : f32 to vector<2x128xf32>
    %9 = arith.mulf %8, %5 : vector<2x128xf32>
    %10 = arith.mulf %9, %5 : vector<2x128xf32>
    %11 = arith.mulf %10, %5 : vector<2x128xf32>
    %12 = arith.addf %5, %11 : vector<2x128xf32>
    %cst_7 = arith.constant 0.797884583 : f32
    %13 = vector.broadcast %cst_7 : f32 to vector<2x128xf32>
    %14 = arith.mulf %13, %12 : vector<2x128xf32>
    %15 = math.tanh %14 : vector<2x128xf32>
    %cst_8 = arith.constant 1.000000e+00 : f32
    %16 = vector.broadcast %cst_8 : f32 to vector<2x128xf32>
    %17 = arith.addf %16, %15 : vector<2x128xf32>
    %18 = arith.mulf %7, %17 : vector<2x128xf32>
    %cst_9 = arith.constant dense<0.000000e+00> : vector<2xf32>
    %19 = vector.multi_reduction <add>, %18, %cst_9 [1] : vector<2x128xf32> to vector<2xf32>
    %20 = vector.shape_cast %19 : vector<2xf32> to vector<2x1xf32>
    %cst_10 = arith.constant 1.280000e+02 : f32
    %21 = vector.broadcast %cst_10 : f32 to vector<2x1xf32>
    %22 = arith.divf %20, %21 : vector<2x1xf32>
    %23 = vector.broadcast %22 : vector<2x1xf32> to vector<2x128xf32>
    %24 = arith.subf %18, %23 : vector<2x128xf32>
    %25 = arith.mulf %24, %24 : vector<2x128xf32>
    %cst_11 = arith.constant dense<0.000000e+00> : vector<2xf32>
    %26 = vector.multi_reduction <add>, %25, %cst_11 [1] : vector<2x128xf32> to vector<2xf32>
    %27 = vector.shape_cast %26 : vector<2xf32> to vector<2x1xf32>
    %cst_12 = arith.constant 1.280000e+02 : f32
    %28 = vector.broadcast %cst_12 : f32 to vector<2x1xf32>
    %29 = arith.divf %27, %28 : vector<2x1xf32>
    %30 = vector.broadcast %22 : vector<2x1xf32> to vector<2x128xf32>
    %31 = arith.subf %18, %30 : vector<2x128xf32>
    %cst_13 = arith.constant 9.99999996E-13 : f32
    %32 = vector.broadcast %cst_13 : f32 to vector<2x1xf32>
    %33 = arith.addf %29, %32 : vector<2x1xf32>
    %34 = math.rsqrt %33 : vector<2x1xf32>
    %35 = vector.broadcast %34 : vector<2x1xf32> to vector<2x128xf32>
    %36 = arith.mulf %31, %35 : vector<2x128xf32>
    %c0_14 = arith.constant 0 : index
    %c0_15 = arith.constant 0 : index
    %37 = vector.load %arg3[%c0_14, %c0_15] : memref<1x128xf32, #tpu.memory_space<vmem>>, vector<1x128xf32>
    %38 = vector.broadcast %37 : vector<1x128xf32> to vector<2x128xf32>
    %39 = arith.mulf %36, %38 : vector<2x128xf32>
    %c0_16 = arith.constant 0 : index
    %c0_17 = arith.constant 0 : index
    %40 = vector.load %arg4[%c0_16, %c0_17] : memref<1x128xf32, #tpu.memory_space<vmem>>, vector<1x128xf32>
    %41 = vector.broadcast %40 : vector<1x128xf32> to vector<2x128xf32>
    %42 = arith.addf %39, %41 : vector<2x128xf32>
    %c0_18 = arith.constant 0 : index
    %c0_19 = arith.constant 0 : index
    %43 = vector.load %arg5[%c0_18, %c0_19] : memref<2x128xf32, #tpu.memory_space<vmem>>, vector<2x128xf32>
    tpu.vector_store %arg5[%c0_18, %c0_19], %42 {strides = array<i32>} : memref<2x128xf32, #tpu.memory_space<vmem>>, vector<2x128xf32>,
    return
  }
}

</mosaic_0001>

<bundles_post_ra>
// kernel: tpu_custom_call.1
= control target key start
LH: loop header
LB: loop body
LE: loop exit
PB: predicated region body
PF: predicated region fallthrough
CT: control target
= control target key end

     0   :  { %10 = vsyncpa [#allocation3], 0  ;;  %s344_s0 = inlined_call_operand.hbm [shape: bf16[2,64], index: 0, kind: input, shape index: {}]   ;;  %s345_s1 = inlined_call_operand.hbm [shape: bf16[64,128], index: 1, kind: input, shape index: {}]   ;;  %s346_s2 = inlined_call_operand.vmem [shape: f32[1,128], index: 2, kind: input, shape index: {}]   ;;  %s347_s3 = inlined_call_operand.vmem [shape: f32[1,128], index: 3, kind: input, shape index: {}]   ;;  %s348_s4 = inlined_call_operand.vmem [shape: f32[1,128], index: 4, kind: input, shape index: {}]   ;;  %s349_s5 = inlined_call_operand.hbm [shape: f32[2,128], index: 5, kind: output, shape index: {}]  }
   0x1   :  { %11 = vsyncpa [#allocation6], 0 }
   0x2   :  { %12 = vsyncpa [#allocation4], 0  ;;  %s18_s20 = sshll.u32 %s344_s0, 4  ;;  %s288_s21 = smov [#allocation2]   ;;  %s19_s20 = int_to_ptr.hbm [resolvable:$true] %s18_s20 }
   0x3   :  { %s20_s22 = sshll.u32 %s288_s21, 4  ;;  %s28_s25 = sshll.u32 %s345_s1, 4  ;;  %s21_s22 = int_to_ptr.vmem [resolvable:$true] %s20_s22  ;;  %s29_s25 = int_to_ptr.hbm [resolvable:$true] %s28_s25 }
   0x4   :  { %23 = dma.hbm_to_vmem [thread:$0]  %s19_s20, 16, %s21_s22, [#allocation3]  }
   0x5   :  { %s289_s26 = smov [#allocation5]   ;;  %s290_s28 = smov 64  }
   0x6   :  { %s30_s27 = sshll.u32 %s289_s26, 4  ;;  %s291_s29 = smov 4   ;;  %s31_s27 = int_to_ptr.vmem [resolvable:$true] %s30_s27 }
   0x7   :  { %36 = dma.hbm_to_vmem [thread:$0]  %s29_s25, 512, %s31_s27, [#allocation6], %s290_s28, %s290_s28, %s291_s29  }
   0x8   :  { %282 = dma.done.wait [#allocation3], 16  }
   0x9   :  { %283 = vsyncadd [#allocation3], 4294967280 }
   0xa   :  { %284 = dma.done.wait [#allocation6], 512  }
   0xb   :  { %285 = vsyncadd [#allocation6], 4294966784  ;;  %v194_v0 = vld [vmem:[#allocation5 + $0x18] sm:$0xff]  ;;  %v193_v1 = vld [vmem:[#allocation5 + $0x10] sm:$0xff]  ;;  %vm89_vm0 = vcmask 523264   ;;  %vm115_vm1 = vcmask 1041408  }
   0xc   :  { %97 = vmatpush.bf16.msra.mxu0 %v194_v0  ;;  %v192_v2 = vld [vmem:[#allocation5 + $0x8] sm:$0xff]  ;;  %v191_v3 = vld [vmem:[#allocation5] sm:$0xff]  ;;  %v52_v4 = vld [vmem:[#allocation2] sm:$0x1]  ;;  %v292_v19 = vmov 128.0   ;;  %s293_s8 = smov [#allocation7]  }
   0xd   :  { %v201_v5 = vld [vmem:[%s346_s2] ss:$0 sm:$0xff]  ;;  %s161_s9 = sshll.u32 %s293_s8, 4  ;;  %s163_s12 = sshll.u32 %s349_s5, 4  ;;  %s162_s9 = int_to_ptr.vmem [resolvable:$true] %s161_s9  ;;  %s164_s12 = int_to_ptr.hbm [resolvable:$true] %s163_s12 }
   0xe   :  { %v202_v40 = vld [vmem:[%s347_s3] ss:$0 sm:$0xff] }
   0xf   :  { %v203_v43 = vld [vmem:[%s348_s4] ss:$0 sm:$0xff] }
  0x10   :  { %98 = vmatpush.bf16.msra.mxu0 %v193_v1 }
  0x14   :  { %99 = vmatpush.bf16.msra.mxu0 %v192_v2 }
  0x18   :  { %100 = vmatpush.bf16.msra.mxu0 %v191_v3 }
  0x1b   :  { %190 = vmatmul.msk.bf16.vlgmr.msra.gmra.mxu0 %vm89_vm0, %v52_v4 }
  0x98   :  { %v102_v6 = vpop.f32.mrf.mxu0 }
  0x99   :  { %v103_v7 = vadd.f32 %v201_v5, %v102_v6 }
  0x9b   :  { %v107_v8 = vmul.f32 0.044715, %v103_v7  ;;  %v106_v15 = vmul.f32 0.5, %v103_v7 }
  0x9d   :  { %v108_v9 = vmul.f32 %v107_v8, %v103_v7 }
  0x9f   :  { %v109_v10 = vmul.f32 %v108_v9, %v103_v7 }
  0xa0   :  { %v104_v11 = vpop.f32.mrf.mxu0 }
  0xa1   :  { %v110_v12 = vadd.f32 %v109_v10, %v103_v7 }
  0xa3   :  { %v111_v13 = vmul.f32 0.7978846, %v110_v12 }
  0xa5   :  { %204 = vtanh.f32 %v111_v13 }
  0xa6   :  { %206 = vrcp.f32 %v292_v19 }
  0xab   :  { %v205_v14 = vpop.eup %204 }
  0xac   :  { %v113_v16 = vadd.f32 1.0, %v205_v14  ;;  %v207_v20 = vpop.eup %206 }
  0xad   :  { %v120_v21 = vmul.f32 128.0, %v207_v20  ;;  %vm124_vm2 = vweird.f32 %v207_v20 }
  0xae   :  { %v114_v17 = vmul.f32 %v113_v16, %v106_v15 }
  0xaf   :  { %v121_v22 = vsub.f32 1.0, %v120_v21 }
  0xb0   :  { %v116_v18 = vsel %vm115_vm1, %v114_v17, 0.0 }
  0xb1   :  { %117 = vadd.xlane.f32.xlu0 %v116_v18  ;;  %v122_v23 = vmul.f32 %v207_v20, %v121_v22 }
  0xb3   :  { %v123_v24 = vadd.f32 %v207_v20, %v122_v23 }
  0xb5   :  { %v125_v25 = vsel %vm124_vm2, %v207_v20, %v123_v24 }
 0x124   :  { %v118_v26 = vpop.xlane.xlu0 %117 }
 0x125   :  { %v126_v27 = vmul.f32 %v125_v25, %v118_v26 }
 0x127   :  { %v127_v28 = vsub.f32 %v114_v17, %v126_v27 }
 0x129   :  { %v128_v29 = vmul.f32 %v127_v28, %v127_v28 }
 0x12b   :  { %v129_v30 = vsel %vm115_vm1, %v128_v29, 0.0 }
 0x12c   :  { %130 = vadd.xlane.f32.xlu0 %v129_v30 }
 0x19f   :  { %v131_v31 = vpop.xlane.xlu0 %130 }
 0x1a0   :  { %v132_v32 = vmul.f32 %v131_v31, %v125_v25 }
 0x1a2   :  { %v133_v33 = vadd.f32 1e-12, %v132_v32 }
 0x1a4   :  { %208 = vrsqrt.f32 %v133_v33  ;;  %vm140_vm4 = vweird.f32 %v133_v33 }
 0x1aa   :  { %v209_v34 = vpop.eup %208 }
 0x1ab   :  { %v135_v35 = vmul.f32 %v209_v34, %v133_v33  ;;  %vm141_vm3 = vweird.f32 %v209_v34 }
 0x1ac   :  { %vm142_vm5 = vmor %vm140_vm4, %vm141_vm3 }
 0x1ad   :  { %v136_v36 = vmul.f32 %v209_v34, %v135_v35 }
 0x1af   :  { %v137_v37 = vmul.f32 0.5, %v136_v36 }
 0x1b1   :  { %v138_v38 = vsub.f32 1.5, %v137_v37 }
 0x1b3   :  { %v139_v39 = vmul.f32 %v209_v34, %v138_v38 }
 0x1b5   :  { %v143_v41 = vsel %vm142_vm5, %v209_v34, %v139_v39 }
 0x1b6   :  { %v144_v42 = vmul.f32 %v143_v41, %v127_v28 }
 0x1b8   :  { %v149_v44 = vmul.f32 %v202_v40, %v144_v42 }
 0x1ba   :  { %v154_v45 = vadd.f32 %v203_v43, %v149_v44 }
 0x1bc   :  { %155 = vst [vmem:[#allocation7] sm:$0x3] %v154_v45 }
 0x1bd   :  { %166 = dma.vmem_to_hbm [thread:$0]  %s162_s9, 32, %s164_s12, [#allocation4]  }
 0x1be   :  { %286 = dma.done.wait [#allocation4], 32  }
 0x1bf   :  { %287 = vsyncadd [#allocation4], 4294967264 }
 0x1c0   :  { %171 = vsyncpa [#allocation3], 1 }
 0x1c1   :  { %172 = vsyncpa [#allocation6], 1 }
 0x1c2   :  { %173 = vsyncpa [#allocation4], 1 }

</bundles_post_ra>
